<compile_context>
chip_gen: v6e
topology: v6e:2x2x1
jax: 0.10.0
libtpu: 0.0.40
codegen_flags: <defaults>
</compile_context>

<pallas_src>
import math
from functools import partial

import jax
import jax.numpy as jnp
from jax.experimental import pallas as pl
from jax.experimental.pallas import tpu as pltpu


def _vmem_limit_bytes():
    """~Half of physical VMEM per generation (64 MiB on v5e/v6e, 32 MiB on v7x)."""
    try:
        cap = int(pltpu.get_tpu_info().vmem_capacity_bytes)
        return max(32 * 1024 * 1024, min(100 * 1024 * 1024, cap // 2))
    except Exception:
        return 32 * 1024 * 1024


# ----------------------------- tiled matmul ---------------------------------

def _matmul_kernel(x_ref, w_ref, o_ref, acc_ref):
    @pl.when(pl.program_id(2) == 0)
    def _():
        acc_ref[...] = jnp.zeros_like(acc_ref)
    acc_ref[...] += jnp.dot(x_ref[...].astype(jnp.bfloat16),
                            w_ref[...].astype(jnp.bfloat16),
                            preferred_element_type=jnp.float32)

    @pl.when(pl.program_id(2) == pl.num_programs(2) - 1)
    def _():
        o_ref[...] = acc_ref[...].astype(o_ref.dtype)


def _pick_tile(dim, pref, align):
    """Largest divisor of `dim` that is <= pref and a multiple of `align`.
    Falls back to the full dim only when no aligned divisor exists (small or
    ragged dims; pad ragged dims upstream for production shapes)."""
    t = (min(pref, dim) // align) * align
    while t >= align:
        if dim % t == 0:
            return t
        t -= align
    return dim


def matmul(x, w, *, out_dtype=jnp.float32):
    """Tiled MXU matmul: x (M, K) @ w (K, N) -> (M, N); operands cast to bf16
    in-kernel, f32 accumulation, store in out_dtype."""
    M, K = x.shape
    K2, N = w.shape
    assert K == K2
    tm = _pick_tile(M, 512, 8)
    tn = _pick_tile(N, 512, 128)   # feed the full 256-wide MXU on v6e/v7x
    tk = _pick_tile(K, 512, 128)
    grid = (M // tm, N // tn, K // tk)
    return pl.pallas_call(
        _matmul_kernel,
        out_shape=jax.ShapeDtypeStruct((M, N), out_dtype),
        grid=grid,
        in_specs=[pl.BlockSpec((tm, tk), lambda i, j, k: (i, k)),
                  pl.BlockSpec((tk, tn), lambda i, j, k: (k, j))],
        out_specs=pl.BlockSpec((tm, tn), lambda i, j, k: (i, j)),
        scratch_shapes=[pltpu.VMEM((tm, tn), jnp.float32)],
        compiler_params=pltpu.CompilerParams(
            dimension_semantics=("parallel", "parallel", "arbitrary"),
            vmem_limit_bytes=_vmem_limit_bytes()),
    )(x, w)


# -------- fused rotary + attention + per-layer norm + residual + final norm --

def _rope_flat(x, cos_t, sin_lo_t, sin_hi_t, half):
    """Rotate-half rotary on the flat (rows, heads*D) layout.
    sin_lo / sin_hi carry the sign / zero pattern so a full-axis roll is safe
    (head-boundary wrap-around lands on zeroed table entries)."""
    left = jnp.concatenate([x[:, half:], x[:, :half]], axis=-1)      # x[c + D/2]
    right = jnp.concatenate([x[:, -half:], x[:, :-half]], axis=-1)   # x[c - D/2]
    return x * cos_t + left * sin_lo_t + right * sin_hi_t


def _fused_attn_kernel(alpha_ref, qkv_ref, x_ref, ropeq_ref, ropek_ref,
                       lnw_ref, flnw_ref, o_ref, *, L, H, Hkv, D, n_rep, T, eps):
    """One batch row-block.  All L layers are processed with static slices of
    the single VMEM-resident qkv block (DMA'd once per step).

    qkv_ref : (T, L*(E+2*Ekv)) bf16   per-layer columns [Q_l | K_l | V_l]
    x_ref   : (T, E) f32              residual input
    ropeq   : (3, T, E) f32           cos / sin_lo / sin_hi, softmax scale folded
    ropek   : (3, L*T, Ekv) f32       cos / sin_lo / sin_hi at cache positions
    lnw_ref : (L, E) f32              per-layer RMSNorm weight * lambda_l
    flnw_ref: (1, E) f32              final RMSNorm weight
    o_ref   : (T, E) bf16             final-normed activation (pre out-proj)
    """
    E = H * D
    Ekv = Hkv * D
    stride = E + 2 * Ekv
    S = L * T
    half = D // 2

    # ---- K cache (rotated once at absolute positions) + V cache, in VMEM ----
    cos_k, sin_lo_k, sin_hi_k = ropek_ref[0], ropek_ref[1], ropek_ref[2]
    k_parts, v_parts = [], []
    for l in range(L):
        off = l * stride
        k_l = qkv_ref[:, off + E: off + E + Ekv].astype(jnp.float32)      # (T, Ekv)
        r0, r1 = l * T, (l + 1) * T
        k_rot = _rope_flat(k_l, cos_k[r0:r1], sin_lo_k[r0:r1],
                           sin_hi_k[r0:r1], half)
        k_parts.append(k_rot.astype(jnp.bfloat16))
        v_parts.append(qkv_ref[:, off + E + Ekv: off + stride])           # bf16
    k_flat = jnp.concatenate(k_parts, axis=0)                             # (S, Ekv)
    v_flat = jnp.concatenate(v_parts, axis=0)                             # (S, Ekv)

    cos_q, sin_lo_q, sin_hi_q = ropeq_ref[0], ropeq_ref[1], ropeq_ref[2]  # (T, E)

    rows = jax.lax.broadcasted_iota(jnp.int32, (T, S), 0)
    cols = jax.lax.broadcasted_iota(jnp.int32, (T, S), 1)

    combined = jnp.zeros((T, E), jnp.float32)
    for l in range(L):                                   # static unroll (small L)
        off = l * stride
        q_l = qkv_ref[:, off: off + E].astype(jnp.float32)                # (T, E)
        q_rot = _rope_flat(q_l, cos_q, sin_lo_q, sin_hi_q,
                           half).astype(jnp.bfloat16)

        # flash-attn bottom-right causal mask: query t sees keys j <= t + l*T.
        # (Q rotary positions are [0, T), matching apply_rotary_emb(q, *rel_pos).)
        mask = cols <= rows + (l * T)

        head_cols = []
        for h in range(H):                               # static unroll over heads
            g = h // n_rep                               # GQA group of this head
            qh = q_rot[:, h * D:(h + 1) * D]             # (T, D) bf16
            kg = k_flat[:, g * D:(g + 1) * D]            # (S, D) bf16
            vg = v_flat[:, g * D:(g + 1) * D]            # (S, D) bf16
            s = jax.lax.dot_general(qh, kg, (((1,), (1,)), ((), ())),
                                    preferred_element_type=jnp.float32)   # (T, S)
            s = jnp.where(mask, s, jnp.float32(-1e30))
            m = jnp.max(s, axis=-1, keepdims=True)
            p = jnp.exp(s - m)
            denom = jnp.sum(p, axis=-1, keepdims=True)
            oh = jnp.dot(p.astype(jnp.bfloat16), vg,
                         preferred_element_type=jnp.float32)              # (T, D)
            head_cols.append(oh / denom)
        attn = jnp.concatenate(head_cols, axis=-1)       # (T, E) f32

        # per-layer RMSNorm with lambda_l pre-folded into the weight, then sum.
        ms = jnp.mean(attn * attn, axis=-1, keepdims=True)
        combined = combined + attn * jax.lax.rsqrt(ms + eps) * lnw_ref[l:l + 1, :]

    # fused residual + final RMSNorm; the out-projection is a separate tiled GEMM.
    pre = combined + alpha_ref[0] * x_ref[...]
    ms = jnp.mean(pre * pre, axis=-1, keepdims=True)
    o_ref[...] = (pre * jax.lax.rsqrt(ms + eps) * flnw_ref[...]).astype(o_ref.dtype)


def fused_attention(qkv, x2d, rope_q, rope_k, lnw_scaled, final_lnw, alpha, *,
                    B, T, L, H, Hkv, D, n_rep, eps=1e-5):
    E = H * D
    Ekv = Hkv * D
    S = L * T
    N = qkv.shape[1]
    kernel = partial(_fused_attn_kernel, L=L, H=H, Hkv=Hkv, D=D,
                     n_rep=n_rep, T=T, eps=eps)
    return pl.pallas_call(
        kernel,
        out_shape=jax.ShapeDtypeStruct((B * T, E), jnp.bfloat16),
        grid=(B,),
        in_specs=[
            pl.BlockSpec(memory_space=pltpu.MemorySpace.SMEM),        # alpha (1,)
            pl.BlockSpec((T, N), lambda b: (b, 0)),                   # qkv row-block
            pl.BlockSpec((T, E), lambda b: (b, 0)),                   # residual x
            pl.BlockSpec((3, T, E), lambda b: (0, 0, 0)),             # Q rope tables
            pl.BlockSpec((3, S, Ekv), lambda b: (0, 0, 0)),           # K rope tables
            pl.BlockSpec((L, E), lambda b: (0, 0)),                   # lambda_l*ln_w_l
            pl.BlockSpec((1, E), lambda b: (0, 0)),                   # final ln weight
        ],
        out_specs=pl.BlockSpec((T, E), lambda b: (b, 0)),
        compiler_params=pltpu.CompilerParams(
            dimension_semantics=("parallel",),
            vmem_limit_bytes=_vmem_limit_bytes()),
    )(alpha, qkv, x2d, rope_q, rope_k, lnw_scaled, final_lnw)


# ----------------------------- JAX glue --------------------------------------

def introspective_flashdiff2_forward(params, x, rel_pos, *, num_heads,
                                     num_kv_heads, head_dim, n_rep):
    B, T, E = x.shape
    L = len(params['layers'])
    H, Hkv, D = num_heads, num_kv_heads, head_dim
    S = L * T
    scale = D ** (-0.5)                      # flash_attn_func default softmax scale
    cos, sin = rel_pos                       # (>=S, D//2)
    x2d = x.reshape(B * T, E)

    # lambda_weights = layer_norm(sigmoid(lambdas)); fold into the per-layer
    # RMSNorm weights so the attention kernel's epilogue applies both at once.
    lam = jax.nn.sigmoid(params['lambdas'])
    lam = (lam - jnp.mean(lam)) / jnp.sqrt(jnp.var(lam) + 1e-5)
    ln_w = jnp.stack([lp['ln_w'] for lp in params['layers']])            # (L, E)
    lnw_scaled = (ln_w * lam[:, None]).astype(jnp.float32)               # (L, E)

    # ---- ONE fused QKV projection for all layers (bf16 out, lane-dense N) ----
    w_qkv = jnp.concatenate(
        [w for lp in params['layers'] for w in (lp['wq'], lp['wk'], lp['wv'])],
        axis=1).astype(jnp.bfloat16)                       # (E, L*(E + 2*E/n_rep))
    qkv = matmul(x2d, w_qkv, out_dtype=jnp.bfloat16)       # (B*T, N) bf16

    # Rotary tables for the flat (head-tiled) layout, rotate-half convention.
    # Q positions [0, T) with the softmax scale folded in; K positions are the
    # absolute cache positions [0, L*T).
    zeros = jnp.zeros_like(sin)
    cos_dup = jnp.concatenate([cos, cos], axis=-1)         # multiplies x[c]
    sin_lo = jnp.concatenate([-sin, zeros], axis=-1)       # multiplies x[c + D/2]
    sin_hi = jnp.concatenate([zeros, sin], axis=-1)        # multiplies x[c - D/2]
    rope_q = (jnp.stack([jnp.tile(cos_dup[:T], (1, H)),
                         jnp.tile(sin_lo[:T], (1, H)),
                         jnp.tile(sin_hi[:T], (1, H))]) * scale).astype(jnp.float32)
    rope_k = jnp.stack([jnp.tile(cos_dup[:S], (1, Hkv)),
                        jnp.tile(sin_lo[:S], (1, Hkv)),
                        jnp.tile(sin_hi[:S], (1, Hkv))]).astype(jnp.float32)

    normed = fused_attention(
        qkv, x2d, rope_q, rope_k, lnw_scaled,
        params['final_ln_w'].reshape(1, E).astype(jnp.float32),
        params['alpha'].astype(jnp.float32),
        B=B, T=T, L=L, H=H, Hkv=Hkv, D=D, n_rep=n_rep)     # (B*T, E) bf16

    out = matmul(normed, params['wout'].astype(jnp.bfloat16),
                 out_dtype=jnp.float32)
    return out.reshape(B, T, E)


# ----------------------------- main ------------------------------------------

if __name__ == "__main__":
    B, T, E = 2, 16, 64
    num_heads = 4            # model_parallel_size = 1
    num_kv_heads = 2         # decoder_kv_attention_heads = 2
    n_layers = 3
    head_dim = E // num_heads
    n_rep = num_heads // num_kv_heads
    max_kv_len = T * n_layers

    key = jax.random.PRNGKey(0)
    keys = jax.random.split(key, 16)

    def kaiming_uniform_T(k, in_dim, out_dim):
        # kaiming_uniform_(a=sqrt(5)) on a (out, in) Linear weight -> bound = 1/sqrt(in).
        # Stored pre-transposed as (in, out) so y = x @ W_T matches x @ W.T.
        bound = 1.0 / math.sqrt(in_dim)
        return jax.random.uniform(k, (in_dim, out_dim), jnp.float32, -bound, bound)

    layers = []
    kidx = 0
    for _ in range(n_layers):
        layers.append({
            'wq': kaiming_uniform_T(keys[kidx + 0], E, E),
            'wk': kaiming_uniform_T(keys[kidx + 1], E, E // n_rep),
            'wv': kaiming_uniform_T(keys[kidx + 2], E, E // n_rep),
            'ln_w': jnp.ones((E,), jnp.float32),
        })
        kidx += 3

    params = {
        'layers': layers,
        # Original module inits lambdas to zeros, which (after sigmoid+layernorm)
        # makes every layer weight exactly 0; use small deterministic values so
        # the attention path contributes numerically.
        'lambdas': 0.1 * jax.random.normal(keys[kidx], (n_layers,), jnp.float32),
        'wout': kaiming_uniform_T(keys[kidx + 1], E, E),
        'final_ln_w': jnp.ones((E,), jnp.float32),
        'alpha': jnp.ones((1,), jnp.float32),
    }

    x = jax.random.normal(keys[kidx + 2], (B, T, E), jnp.float32)

    # rotary tables covering the accumulated KV length (3 * tgt_len positions)
    inv_freq = 1.0 / (10000.0 ** (jnp.arange(0, head_dim, 2, dtype=jnp.float32)
                                  / head_dim))
    pos = jnp.arange(max_kv_len, dtype=jnp.float32)
    angles = pos[:, None] * inv_freq[None, :]          # (max_kv_len, head_dim//2)
    rel_pos = (jnp.cos(angles), jnp.sin(angles))

    out = introspective_flashdiff2_forward(
        params, x, rel_pos,
        num_heads=num_heads, num_kv_heads=num_kv_heads,
        head_dim=head_dim, n_rep=n_rep)
    out = jax.block_until_ready(out)
    assert out.shape == (B, T, E)
    assert bool(jnp.all(jnp.isfinite(out)))
    print("KERNEL_OK")
</pallas_src>

<mosaic_0001>
module attributes {stable_mosaic.version = 11 : i64} {
  func.func @_matmul_kernel(%arg0: i32, %arg1: i32, %arg2: i32, %arg3: memref<32x64xf32, #tpu.memory_space<vmem>>, %arg4: memref<64x384xbf16, #tpu.memory_space<vmem>>, %arg5: memref<32x384xbf16, #tpu.memory_space<vmem>>, %arg6: memref<32x384xf32, #tpu.memory_space<vmem>>) attributes {dimension_semantics = [#tpu.dimension_semantics<parallel>, #tpu.dimension_semantics<parallel>, #tpu.dimension_semantics<arbitrary>], iteration_bounds = array<i64: 1, 1, 1>, scalar_prefetch = 0 : i64, scratch_operands = 1 : i64, tpu.core_type = #tpu.core_type<tc>, window_params = [{transform_indices = @transform_0, window_bounds = array<i64: 32, 64>}, {transform_indices = @transform_1, window_bounds = array<i64: 64, 384>}, {transform_indices = @transform_2, window_bounds = array<i64: 32, 384>}]} {
    %c0_i32 = arith.constant 0 : i32
    %0 = arith.cmpi eq, %arg2, %c0_i32 : i32
    %1 = arith.extui %0 : i1 to i32
    %c0_i32_0 = arith.constant 0 : i32
    %2 = arith.cmpi ne, %1, %c0_i32_0 : i32
    scf.if %2 {
      %cst_10 = arith.constant 0.000000e+00 : f32
      %13 = vector.broadcast %cst_10 : f32 to vector<32x384xf32>
      %c0_11 = arith.constant 0 : index
      %c0_12 = arith.constant 0 : index
      %14 = vector.load %arg6[%c0_11, %c0_12] : memref<32x384xf32, #tpu.memory_space<vmem>>, vector<32x384xf32>
      tpu.vector_store %arg6[%c0_11, %c0_12], %13 {strides = array<i32>} : memref<32x384xf32, #tpu.memory_space<vmem>>, vector<32x384xf32>,
    } else {
    }
    %c0 = arith.constant 0 : index
    %c0_1 = arith.constant 0 : index
    %3 = vector.load %arg6[%c0, %c0_1] : memref<32x384xf32, #tpu.memory_space<vmem>>, vector<32x384xf32>
    %c0_2 = arith.constant 0 : index
    %c0_3 = arith.constant 0 : index
    %4 = vector.load %arg3[%c0_2, %c0_3] : memref<32x64xf32, #tpu.memory_space<vmem>>, vector<32x64xf32>
    %5 = arith.truncf %4 : vector<32x64xf32> to vector<32x64xbf16>
    %c0_4 = arith.constant 0 : index
    %c0_5 = arith.constant 0 : index
    %6 = vector.load %arg4[%c0_4, %c0_5] : memref<64x384xbf16, #tpu.memory_space<vmem>>, vector<64x384xbf16>
    %cst = arith.constant dense<0.000000e+00> : vector<32x384xf32>
    %7 = tpu.matmul %5, %6, %cst {dimension_numbers = #tpu.dot_dimension_numbers<[1], [0], [0], [1], [0, 0, 1, 1], [], []>} : vector<32x64xbf16>, vector<64x384xbf16>, vector<32x384xf32> -> vector<32x384xf32>
    %8 = arith.addf %3, %7 : vector<32x384xf32>
    %c0_6 = arith.constant 0 : index
    %c0_7 = arith.constant 0 : index
    %9 = vector.load %arg6[%c0_6, %c0_7] : memref<32x384xf32, #tpu.memory_space<vmem>>, vector<32x384xf32>
    tpu.vector_store %arg6[%c0_6, %c0_7], %8 {strides = array<i32>} : memref<32x384xf32, #tpu.memory_space<vmem>>, vector<32x384xf32>,
    %c0_i32_8 = arith.constant 0 : i32
    %10 = arith.cmpi eq, %arg2, %c0_i32_8 : i32
    %11 = arith.extui %10 : i1 to i32
    %c0_i32_9 = arith.constant 0 : i32
    %12 = arith.cmpi ne, %11, %c0_i32_9 : i32
    scf.if %12 {
      %c0_10 = arith.constant 0 : index
      %c0_11 = arith.constant 0 : index
      %13 = vector.load %arg6[%c0_10, %c0_11] : memref<32x384xf32, #tpu.memory_space<vmem>>, vector<32x384xf32>
      %14 = arith.truncf %13 : vector<32x384xf32> to vector<32x384xbf16>
      %c0_12 = arith.constant 0 : index
      %c0_13 = arith.constant 0 : index
      %15 = vector.load %arg5[%c0_12, %c0_13] : memref<32x384xbf16, #tpu.memory_space<vmem>>, vector<32x384xbf16>
      tpu.vector_store %arg5[%c0_12, %c0_13], %14 {strides = array<i32>} : memref<32x384xbf16, #tpu.memory_space<vmem>>, vector<32x384xbf16>,
    } else {
    }
    return
  }
  func.func @transform_0(%arg0: i32, %arg1: i32, %arg2: i32) -> (i32, i32) {
    %c0_i32 = arith.constant 0 : i32
    return %arg0, %arg2 : i32, i32
  }
  func.func @transform_1(%arg0: i32, %arg1: i32, %arg2: i32) -> (i32, i32) {
    %c0_i32 = arith.constant 0 : i32
    return %arg2, %arg1 : i32, i32
  }
  func.func @transform_2(%arg0: i32, %arg1: i32, %arg2: i32) -> (i32, i32) {
    %c0_i32 = arith.constant 0 : i32
    return %arg0, %arg1 : i32, i32
  }
}

</mosaic_0001>

<bundles_post_ra>
// kernel: tpu_custom_call.1
= control target key start
LH: loop header
LB: loop body
LE: loop exit
PB: predicated region body
PF: predicated region fallthrough
CT: control target
= control target key end

     0   :  { %7 = vsyncpa [#allocation4], 0  ;;  %s551_s0 = inlined_call_operand.hbm [shape: f32[32,64], index: 0, kind: input, shape index: {}]   ;;  %s552_s1 = inlined_call_operand.hbm [shape: bf16[64,384], index: 1, kind: input, shape index: {}]   ;;  %s553_s2 = inlined_call_operand.hbm [shape: bf16[32,384], index: 2, kind: output, shape index: {}]  }
   0x1   :  { %8 = vsyncpa [#allocation7], 0 }
   0x2   :  { %9 = vsyncpa [#allocation5], 0  ;;  %s509_s9 = smov [#allocation3]  }
   0x3   :  { %s15_s10 = sshll.u32 %s509_s9, 4  ;;  %s16_s10 = int_to_ptr.vmem [resolvable:$true] %s15_s10 }
   0x4   :  { %s451_s11 = scalar_lea.vmem %s16_s10, 512  ;;  %p456_p1 = scmp.lt.s32.totalorder %s16_s10, %s16_s10 }
   0x5   :  { %p452_p0 = scmp.ne.s32.totalorder %s16_s10, %s451_s11  ;;  %p457_p2 = scmp.lt.s32.totalorder %s451_s11, %s451_s11 }
   0x7   :  { %p458_p3 = por %p457_p2, %p456_p1 }
   0x9   :  { %p459_p4 = pnand %p458_p3, %p452_p0 }
   0xb   :  { %462 = shalt.err (!%p459_p4)
}
   0xc   :  { %s510_s12 = smov 128   ;;  %s511_s13 = smov 8  }
   0xd   :  { %21 = dma.hbm_to_vmem [thread:$0]  %s551_s0, 512, %s16_s10, [#allocation4], %s510_s12, %s510_s12, %s511_s13  }
   0xe   :  { %s512_s16 = smov [#allocation6]  }
   0xf   :  { %s27_s17 = sshll.u32 %s512_s16, 4  ;;  %s28_s17 = int_to_ptr.vmem [resolvable:$true] %s27_s17 }
  0x10   :  { %s471_s18 = scalar_lea.vmem %s28_s17, 1536  ;;  %p476_p6 = scmp.lt.s32.totalorder %s28_s17, %s28_s17 }
  0x11   :  { %p472_p5 = scmp.ne.s32.totalorder %s28_s17, %s471_s18  ;;  %p477_p7 = scmp.lt.s32.totalorder %s471_s18, %s471_s18 }
  0x13   :  { %p478_p8 = por %p477_p7, %p476_p6 }
  0x15   :  { %p479_p9 = pnand %p478_p8, %p472_p5 }
  0x17   :  { %482 = shalt.err (!%p479_p9)
}
  0x18   :  { %s513_s19 = smov 192   ;;  %s514_s20 = smov 12  }
  0x19   :  { %33 = dma.hbm_to_vmem [thread:$0]  %s552_s1, 1536, %s28_s17, [#allocation7], %s513_s19, %s513_s19, %s514_s20  }
  0x1a   :  { %503 = dma.done.wait [#allocation4], 512  }
  0x1b   :  { %504 = vsyncadd [#allocation4], 4294966784 }
  0x1c   :  { %505 = dma.done.wait [#allocation7], 1536  }
  0x1d   :  { %506 = vsyncadd [#allocation7], 4294965760  ;;  %v515_v0 = vmov 0   ;;  %v427_v1 = vld [vmem:[#allocation6 + $0x4c] ss:$12 sps:$4 sm:$0xff]   ;;  %v69_v11 = vld [vmem:[#allocation3] sm:$0xff] }
  0x1e   :  { %194 = vmatprep.mubr.bf16.mxu0 %v515_v0  ;;  %v429_v2 = vld [vmem:[#allocation6 + $0x48] ss:$12 sps:$4 sm:$0xff]   ;;  %170 = vmatprep.subr.bf16.mxu0 %v427_v1  ;;  %v430_v3 = vld [vmem:[#allocation6 + $0x50] ss:$12 sps:$4 sm:$0xff]   ;;  %v434_v6 = vld [vmem:[#allocation6 + $0x38] ss:$12 sps:$4 sm:$0xff]  }
  0x1f   :  { %171 = vmatpush1.bf16.msra.mxu0 %v429_v2  ;;  %v431_v4 = vld [vmem:[#allocation6 + $0x34] ss:$12 sps:$4 sm:$0xff]   ;;  %v433_v5 = vld [vmem:[#allocation6 + $0x30] ss:$12 sps:$4 sm:$0xff]   ;;  %407 = vmatprep.subr.bf16.mxu1 %v430_v3  ;;  %v437_v9 = vld [vmem:[#allocation6 + $0x18] ss:$12 sps:$4 sm:$0xff]  }
  0x20   :  { %408 = vmatpush3.bf16.msra.mxu1 %v430_v3  ;;  %172 = vmatprep.subr.bf16.mxu0 %v431_v4  ;;  %v435_v7 = vld [vmem:[#allocation6 + $0x1c] ss:$12 sps:$4 sm:$0xff]   ;;  %v438_v8 = vld [vmem:[#allocation6 + $0x20] ss:$12 sps:$4 sm:$0xff]   ;;  %v439_v10 = vld [vmem:[#allocation6 + $0x4] ss:$12 sps:$4 sm:$0xff]  }
  0x21   :  { %409 = vmatprep.subr.bf16.mxu1 %v434_v6  ;;  %v70_v12 = vld [vmem:[#allocation3 + $0x8] sm:$0xff]  ;;  %vm155_vm0 = vcmask 523264   ;;  %v71_v16 = vld [vmem:[#allocation3 + $0x10] sm:$0xff]  ;;  %v72_v17 = vld [vmem:[#allocation3 + $0x18] sm:$0xff]  ;;  %s516_s0 = smov [#allocation8]  }
  0x22   :  { %v442_v13 = vld [vmem:[#allocation6 + $0x8] ss:$12 sps:$4 sm:$0xff]   ;;  %v73_v14 = vpack.c.bf16 %v70_v12, %v69_v11  ;;  %v441_v15 = vld [vmem:[#allocation6] ss:$12 sps:$4 sm:$0xff]   ;;  %v74_v18 = vpack.c.bf16 %v72_v17, %v71_v16  ;;  %s356_s1 = sshll.u32 %s516_s0, 4  ;;  %s357_s1 = int_to_ptr.vmem [resolvable:$true] %s356_s1 }
  0x23   :  { %173 = vmatpush1.bf16.msra.mxu0 %v433_v5  ;;  %s483_s23 = scalar_lea.vmem %s357_s1, 768  ;;  %p488_p11 = scmp.lt.s32.totalorder %s357_s1, %s357_s1 }
  0x24   :  { %174 = vmatprep.subr.bf16.mxu0 %v435_v7  ;;  %410 = vmatpush3.bf16.msra.mxu1 %v434_v6  ;;  %p484_p10 = scmp.ne.s32.totalorder %s357_s1, %s483_s23  ;;  %p489_p12 = scmp.lt.s32.totalorder %s483_s23, %s483_s23 }
  0x25   :  { %411 = vmatprep.subr.bf16.mxu1 %v438_v8  ;;  %415 = vmatprep.mubr.msk.bf16.mxu1 %vm155_vm0, %v73_v14 }
  0x26   :  { %p490_p13 = por %p489_p12, %p488_p11 }
  0x27   :  { %175 = vmatpush1.bf16.msra.mxu0 %v437_v9 }
  0x28   :  { %176 = vmatprep.subr.bf16.mxu0 %v439_v10  ;;  %412 = vmatpush3.bf16.msra.mxu1 %v438_v8  ;;  %p491_p0 = pnand %p490_p13, %p484_p10 }
  0x29   :  { %413 = vmatprep.subr.bf16.mxu1 %v442_v13 }
  0x2b   :  { %177 = vmatpush1.bf16.msra.mxu0 %v441_v15 }
  0x2c   :  { %414 = vmatpush3.bf16.msra.mxu1 %v442_v13 }
  0x2e   :  { %381 = vmatmul.mubr.msk.bf16.vlgmr.msra.gmra.mxu0 %vm155_vm0, %v73_v14 }
  0x2f   :  { %204 = vmatprep.mubr.bf16.mxu0 %v515_v0  ;;  %416 = vmatmul.mubr.msk.bf16.vlgmr.msra.gmra.mxu1 %vm155_vm0, %v74_v18 }
  0x36   :  { %382 = vmatmul.mubr.msk.bf16.gmra.mxu0 %vm155_vm0, %v74_v18 }
  0xee   :  { %v196_v19 = vpop.f32.mrf.mxu0 }
  0xef   :  { %v417_v21 = vpop.f32.mrf.mxu1 }
  0xf0   :  { %v198_v20 = vpop.f32.mrf.mxu0  ;;  %v398_v23 = vpack.c.bf16 %v417_v21, %v417_v21 }
  0xf1   :  { %v393_v22 = vpack.c.bf16 %v198_v20, %v196_v19  ;;  %v249_v25 = vpop.f32.mrf.mxu1 }
  0xf2   :  { %v200_v24 = vpop.f32.mrf.mxu0  ;;  %348 = vst [vmem:[#allocation8 + $0x20] sm:$0xf] %v398_v23  ;;  %v394_v26 = vpack.c.bf16 %v249_v25, %v249_v25 }
  0xf3   :  { %343 = vst [vmem:[#allocation8] sm:$0xff] %v393_v22  ;;  %v418_v28 = vpop.f32.mrf.mxu1 }
  0xf4   :  { %v202_v27 = vpop.f32.mrf.mxu0  ;;  %344 = vst [vmem:[#allocation8 + $0x8] sm:$0xf] %v394_v26  ;;  %v400_v30 = vpack.c.bf16 %v418_v28, %v418_v28 }
  0xf5   :  { %v395_v29 = vpack.c.bf16 %v202_v27, %v200_v24  ;;  %v252_v32 = vpop.f32.mrf.mxu1 }
  0xf6   :  { %v206_v31 = vpop.f32.mrf.mxu0  ;;  %350 = vst [vmem:[#allocation8 + $0x2c] sm:$0xf] %v400_v30  ;;  %v396_v33 = vpack.c.bf16 %v252_v32, %v252_v32 }
  0xf7   :  { %345 = vst [vmem:[#allocation8 + $0xc] sm:$0xff] %v395_v29 }
  0xf8   :  { %v208_v34 = vpop.f32.mrf.mxu0  ;;  %346 = vst [vmem:[#allocation8 + $0x14] sm:$0xf] %v396_v33 }
  0xf9   :  { %v397_v35 = vpack.c.bf16 %v208_v34, %v206_v31 }
  0xfa   :  { %v210_v36 = vpop.f32.mrf.mxu0 }
  0xfb   :  { %347 = vst [vmem:[#allocation8 + $0x18] sm:$0xff] %v397_v35 }
  0xfc   :  { %v212_v37 = vpop.f32.mrf.mxu0 }
  0xfd   :  { %v399_v38 = vpack.c.bf16 %v212_v37, %v210_v36 }
  0xff   :  { %349 = vst [vmem:[#allocation8 + $0x24] sm:$0xff] %v399_v38 }
 0x100   :  { %494 = shalt.err (!%p491_p0)
}
 0x101   :  { %362 = dma.vmem_to_hbm [thread:$0]  %s357_s1, 768, %s553_s2, [#allocation5], %s513_s19, %s513_s19, %s514_s20  }
 0x102   :  { %507 = dma.done.wait [#allocation5], 768  }
 0x103   :  { %508 = vsyncadd [#allocation5], 4294966528 }
 0x104   :  { %366 = vsyncpa [#allocation4], 1 }
 0x105   :  { %367 = vsyncpa [#allocation7], 1 }
 0x106   :  { %368 = vsyncpa [#allocation5], 1 }

</bundles_post_ra>
